<compile_context>
chip_gen: v7x
topology: tpu7x:2x2x1
jax: 0.10.0
libtpu: 0.0.40
codegen_flags: <defaults>
</compile_context>

<pallas_src>
import math
import functools

import jax
import jax.numpy as jnp
from jax import lax
from jax.experimental import pallas as pl
from jax.experimental.pallas import tpu as pltpu


# ============================ in-kernel helpers =============================

def _layer_norm_f32(x, gamma, eps=1e-5):
    """LayerNorm over the last dim, no bias (f32 VPU math)."""
    mu = jnp.mean(x, axis=-1, keepdims=True)
    xc = x - mu
    var = jnp.mean(xc * xc, axis=-1, keepdims=True)
    return xc * lax.rsqrt(var + eps) * gamma


def _gelu(x, approx):
    if approx:
        # tanh approximation -> EUP slot (frees the VALU between the two dots)
        c = math.sqrt(2.0 / math.pi)
        return 0.5 * x * (1.0 + jnp.tanh(c * (x + 0.044715 * x * x * x)))
    # exact erf GELU == torch nn.GELU() default
    return 0.5 * x * (1.0 + lax.erf(x * (1.0 / math.sqrt(2.0))))


def _pick_tile(n, candidates):
    for c in candidates:
        if n % c == 0:
            return c
    return n


# ==================== kernel 0: input projection + pos add ==================

def _embed_kernel(x_ref, w_ref, pe_ref, o_ref):
    x = x_ref[...].astype(w_ref.dtype)                   # cast right before dot
    proj = jnp.dot(x, w_ref[...], preferred_element_type=jnp.float32)
    o_ref[...] = (proj + pe_ref[...].astype(jnp.float32)).astype(o_ref.dtype)


def _embed(x, w_in, pe, *, tok_tile):
    N, d_in = x.shape
    C = w_in.shape[1]
    assert N % tok_tile == 0
    nt = N // tok_tile
    return pl.pallas_call(
        _embed_kernel,
        out_shape=jax.ShapeDtypeStruct((N, C), jnp.float32),
        grid_spec=pltpu.PrefetchScalarGridSpec(
            num_scalar_prefetch=0,
            grid=(nt,),
            in_specs=[
                pl.BlockSpec((tok_tile, d_in), lambda t: (t, 0)),
                pl.BlockSpec((d_in, C), lambda t: (0, 0)),
                pl.BlockSpec((tok_tile, C), lambda t: (t, 0)),
            ],
            out_specs=pl.BlockSpec((tok_tile, C), lambda t: (t, 0)),
        ),
        compiler_params=pltpu.CompilerParams(dimension_semantics=("parallel",)),
    )(x, w_in, pe)


# =========== kernel 1: LayerNorm + fused QKV -> q (pre-scaled), k, v =========

def _ln_qkv_kernel(x_ref, g_ref, w_ref, q_ref, k_ref, v_ref, *, q_scale):
    C = x_ref.shape[-1]
    xn = _layer_norm_f32(x_ref[...].astype(jnp.float32),
                         g_ref[...].astype(jnp.float32))
    qkv = jnp.dot(xn.astype(w_ref.dtype), w_ref[...],
                  preferred_element_type=jnp.float32)         # (tok, 3C) f32
    # 1/sqrt(Dh) folded into q at store time (once per token, no extra HBM).
    q_ref[...] = (qkv[:, :C] * q_scale).astype(q_ref.dtype)
    k_ref[...] = qkv[:, C:2 * C].astype(k_ref.dtype)
    v_ref[...] = qkv[:, 2 * C:].astype(v_ref.dtype)


def _ln_qkv(x, gamma, w_attn, *, tok_tile, q_scale):
    N, C = x.shape
    assert N % tok_tile == 0
    nt = N // tok_tile
    cdt = w_attn.dtype                        # q/k/v stored in compute dtype
    kernel = functools.partial(_ln_qkv_kernel, q_scale=q_scale)
    out_sd = jax.ShapeDtypeStruct((N, C), cdt)
    tok_spec = pl.BlockSpec((tok_tile, C), lambda t: (t, 0))
    return pl.pallas_call(
        kernel,
        out_shape=(out_sd, out_sd, out_sd),
        grid_spec=pltpu.PrefetchScalarGridSpec(
            num_scalar_prefetch=0,
            grid=(nt,),
            in_specs=[
                tok_spec,
                pl.BlockSpec((1, C), lambda t: (0, 0)),
                pl.BlockSpec((C, 3 * C), lambda t: (0, 0)),
            ],
            out_specs=(tok_spec, tok_spec, tok_spec),
        ),
        compiler_params=pltpu.CompilerParams(dimension_semantics=("parallel",)),
    )(x, gamma, w_attn)


# ========== kernel 2: attention (kv + heads in-kernel) + proj + residual =====

def _attn_kernel(x_ref, q_ref, k_ref, v_ref, wp_ref, o_ref, *,
                 n_head, approx_recip):
    cdt = wp_ref.dtype
    C = q_ref.shape[-1]
    Dh = C // n_head

    ys = []
    for h in range(n_head):          # small static loop; heads stay in-kernel
        lo = h * Dh
        q_h = q_ref[:, lo:lo + Dh]                            # (tq, Dh) cdt
        k_h = k_ref[:, lo:lo + Dh]                            # (T,  Dh) cdt
        # q @ k^T without materializing a transpose (contract dim 1 with 1).
        s = lax.dot_general(q_h, k_h, (((1,), (1,)), ((), ())),
                            preferred_element_type=jnp.float32)   # (tq, T)
        m = jnp.max(s, axis=-1, keepdims=True)
        p = jnp.exp(s - m)                                        # f32
        l = jnp.sum(p, axis=-1, keepdims=True)
        # p @ v with full K=T contraction depth.
        y = jnp.dot(p.astype(cdt), v_ref[:, lo:lo + Dh],
                    preferred_element_type=jnp.float32)           # (tq, Dh)
        if approx_recip:
            inv_l = pl.reciprocal(l, approx=True)    # EUP slot, off the VALU
        else:
            inv_l = 1.0 / l
        ys.append(y * inv_l)

    # Lane-concat the heads once, then a single K=C projection matmul.
    y_cat = jnp.concatenate(ys, axis=-1).astype(cdt)              # (tq, C)
    att = jnp.dot(y_cat, wp_ref[...], preferred_element_type=jnp.float32)
    o_ref[...] = (x_ref[...].astype(jnp.float32) + att).astype(o_ref.dtype)


def _attention(x, q, k, v, w_proj, *, n_head, q_tile, approx_recip):
    B, T, C = x.shape
    assert T % q_tile == 0
    nq = T // q_tile
    kernel = functools.partial(_attn_kernel, n_head=n_head,
                               approx_recip=approx_recip)
    return pl.pallas_call(
        kernel,
        out_shape=jax.ShapeDtypeStruct((B, T, C), jnp.float32),
        grid_spec=pltpu.PrefetchScalarGridSpec(
            num_scalar_prefetch=0,
            grid=(B, nq),
            in_specs=[
                pl.BlockSpec((None, q_tile, C), lambda b, qi: (b, qi, 0)),  # x
                pl.BlockSpec((None, q_tile, C), lambda b, qi: (b, qi, 0)),  # q
                pl.BlockSpec((None, T, C), lambda b, qi: (b, 0, 0)),        # k
                pl.BlockSpec((None, T, C), lambda b, qi: (b, 0, 0)),        # v
                pl.BlockSpec((C, C), lambda b, qi: (0, 0)),                 # Wp
            ],
            out_specs=pl.BlockSpec((None, q_tile, C), lambda b, qi: (b, qi, 0)),
        ),
        compiler_params=pltpu.CompilerParams(
            dimension_semantics=("parallel", "parallel")),
    )(x, q, k, v, w_proj)


# ============ kernel 3: LayerNorm + FFN (hidden dim tiled) + residual =======

def _ln_ffn_kernel(x_ref, g_ref, wi_ref, wo_ref, o_ref, xn_sc, acc_sc, *,
                   approx_gelu):
    hi = pl.program_id(1)

    @pl.when(hi == 0)
    def _init():
        x = x_ref[...].astype(jnp.float32)
        xn = _layer_norm_f32(x, g_ref[...].astype(jnp.float32))
        xn_sc[...] = xn.astype(xn_sc.dtype)      # stored in compute dtype
        acc_sc[...] = x                          # seed with residual

    hdd = jnp.dot(xn_sc[...], wi_ref[...],
                  preferred_element_type=jnp.float32)     # (tok, h_tile)
    hdd = _gelu(hdd, approx_gelu).astype(wi_ref.dtype)
    acc_sc[...] = acc_sc[...] + jnp.dot(hdd, wo_ref[...],
                                        preferred_element_type=jnp.float32)

    @pl.when(hi == pl.num_programs(1) - 1)
    def _finalize():
        o_ref[...] = acc_sc[...].astype(o_ref.dtype)


def _ln_ffn(x, gamma, w_in, w_out, *, tok_tile, h_tile, approx_gelu):
    N, C = x.shape
    H = w_in.shape[1]
    assert N % tok_tile == 0 and H % h_tile == 0
    nt = N // tok_tile
    nh = H // h_tile
    kernel = functools.partial(_ln_ffn_kernel, approx_gelu=approx_gelu)
    return pl.pallas_call(
        kernel,
        out_shape=jax.ShapeDtypeStruct((N, C), jnp.float32),
        grid_spec=pltpu.PrefetchScalarGridSpec(
            num_scalar_prefetch=0,
            grid=(nt, nh),
            in_specs=[
                pl.BlockSpec((tok_tile, C), lambda t, hi: (t, 0)),
                pl.BlockSpec((1, C), lambda t, hi: (0, 0)),
                pl.BlockSpec((C, h_tile), lambda t, hi: (0, hi)),
                pl.BlockSpec((h_tile, C), lambda t, hi: (hi, 0)),
            ],
            out_specs=pl.BlockSpec((tok_tile, C), lambda t, hi: (t, 0)),
            scratch_shapes=[
                pltpu.VMEM((tok_tile, C), w_in.dtype),    # LN(x), compute dtype
                pltpu.VMEM((tok_tile, C), jnp.float32),   # residual + FFN acc
            ],
        ),
        compiler_params=pltpu.CompilerParams(
            dimension_semantics=("parallel", "arbitrary")),
    )(x, gamma, w_in, w_out)


# =============================== cls head ===================================

def _cls_head_kernel(x_ref, w_ref, b_ref, o_ref):
    x = x_ref[...].astype(w_ref.dtype)
    o_ref[...] = (jnp.dot(x, w_ref[...], preferred_element_type=jnp.float32)
                  + b_ref[...].astype(jnp.float32)).astype(o_ref.dtype)


def _cls_head(x0, w_cls, b_cls):
    B, _ = x0.shape
    n_cls = w_cls.shape[1]
    return pl.pallas_call(
        _cls_head_kernel,
        out_shape=jax.ShapeDtypeStruct((B, n_cls), jnp.float32),
    )(x0, w_cls, b_cls)


# ============================ model assembly ================================

def _encoder_layer(h_flat, blk, *, B, T, n_head, q_tile, tok_tile, h_tile,
                   approx_recip, approx_gelu):
    ln1_g, w_attn, w_proj, ln2_g, w_in, w_out = blk
    C = h_flat.shape[-1]
    assert C % n_head == 0
    Dh = C // n_head

    q, k, v = _ln_qkv(h_flat, ln1_g, w_attn, tok_tile=tok_tile,
                      q_scale=1.0 / math.sqrt(Dh))          # (B*T, C) compute dt
    # Free metadata reshapes (leading-dim split only, no data movement).
    x3 = h_flat.reshape(B, T, C)
    att = _attention(x3, q.reshape(B, T, C), k.reshape(B, T, C),
                     v.reshape(B, T, C), w_proj, n_head=n_head,
                     q_tile=q_tile, approx_recip=approx_recip)   # + residual
    h_flat = att.reshape(B * T, C)
    h_flat = _ln_ffn(h_flat, ln2_g, w_in, w_out, tok_tile=tok_tile,
                     h_tile=h_tile, approx_gelu=approx_gelu)     # + residual
    return h_flat


def pbt_forward(params, x, pos, *, n_head, q_tile=None, tok_tile=None,
                h_tile=None, approx_recip=False, approx_gelu=False):
    """PBT.forward(x, pos) with bert=False, split_sections=None (inference)."""
    w_proj_in = params["w_proj_in"]                           # (d_input, C)
    C = w_proj_in.shape[1]
    B, T, d_in = x.shape
    N = B * T
    if q_tile is None:
        q_tile = _pick_tile(T, (256, 128, 64, 32, 16, 8))
    if tok_tile is None:
        tok_tile = _pick_tile(N, (1024, 512, 256, 128, 64, 32, 16, 8))
    if h_tile is None:
        h_tile = _pick_tile(4 * C, (512, 256, 128))

    # Positional-embedding lookup = XLA gather in the wrapper (see TODO above).
    pe = jnp.take(params["pos_emb"], pos, axis=0)             # (B, T, C) f32

    h = _embed(x.reshape(N, d_in), w_proj_in, pe.reshape(N, C),
               tok_tile=tok_tile)                             # (B*T, C) f32
    for blk in params["blocks"]:
        h = _encoder_layer(h, blk, B=B, T=T, n_head=n_head, q_tile=q_tile,
                           tok_tile=tok_tile, h_tile=h_tile,
                           approx_recip=approx_recip, approx_gelu=approx_gelu)

    h = h.reshape(B, T, C)
    logits = _cls_head(h[:, 0], params["w_cls"], params["b_cls"])
    return h, logits, None


# ===================== parameters (PyTorch-equivalent init) =================
# Linear weights are stored as (in_features, out_features) so kernels compute
# x @ W (equivalent to PyTorch's x @ W.T with W of shape (out, in)).

def make_params(key, *, d_input, d_model, n_blocks, n_head, n_classes,
                num_embeddings):
    assert d_model % n_head == 0
    C = d_model
    std = 0.02
    std_proj = 0.02 / math.sqrt(2 * n_blocks)
    key, k_in, k_pe, k_cls = jax.random.split(key, 4)
    blocks = []
    for _ in range(n_blocks):
        key, k1, k2, k3, k4 = jax.random.split(key, 5)
        blocks.append((
            jnp.ones((1, C), jnp.float32),                              # ln1 w
            std * jax.random.normal(k1, (C, 3 * C), jnp.float32),       # attn
            std_proj * jax.random.normal(k2, (C, C), jnp.float32),      # proj
            jnp.ones((1, C), jnp.float32),                              # ln2 w
            std * jax.random.normal(k3, (C, 4 * C), jnp.float32),       # ff in
            std_proj * jax.random.normal(k4, (4 * C, C), jnp.float32),  # ff out
        ))
    return {
        "w_proj_in": std * jax.random.normal(k_in, (d_input, C), jnp.float32),
        "pos_emb": 0.002 * jax.random.normal(k_pe, (num_embeddings, C),
                                             jnp.float32),
        "blocks": blocks,
        "w_cls": std * jax.random.normal(k_cls, (C, n_classes), jnp.float32),
        "b_cls": jnp.zeros((1, n_classes), jnp.float32),
    }


def cast_matmul_weights(params, dtype):
    """Cast matmul weights to `dtype` (LN gammas / pos-emb / bias stay f32)."""
    def cast_blk(blk):
        ln1, wa, wp, ln2, wi, wo = blk
        return (ln1, wa.astype(dtype), wp.astype(dtype),
                ln2, wi.astype(dtype), wo.astype(dtype))
    return {
        "w_proj_in": params["w_proj_in"].astype(dtype),
        "pos_emb": params["pos_emb"],
        "blocks": [cast_blk(b) for b in params["blocks"]],
        "w_cls": params["w_cls"].astype(dtype),
        "b_cls": params["b_cls"],
    }


# ===================== pure-JAX reference (f32, for checking) ===============

def _ref_encoder_layer(x, blk, n_head):
    ln1_g, w_attn, w_proj, ln2_g, w_in, w_out = blk
    B, T, C = x.shape
    Dh = C // n_head

    def ln(z, g):
        mu = jnp.mean(z, -1, keepdims=True)
        var = jnp.mean((z - mu) ** 2, -1, keepdims=True)
        return (z - mu) / jnp.sqrt(var + 1e-5) * g

    xn = ln(x, ln1_g[0])
    qkv = xn @ w_attn
    q, k, v = jnp.split(qkv, 3, axis=-1)
    q = q.reshape(B, T, n_head, Dh).transpose(0, 2, 1, 3)
    k = k.reshape(B, T, n_head, Dh).transpose(0, 2, 1, 3)
    v = v.reshape(B, T, n_head, Dh).transpose(0, 2, 1, 3)
    s = jnp.einsum("bhqd,bhkd->bhqk", q, k) / math.sqrt(Dh)
    p = jax.nn.softmax(s, axis=-1)
    y = jnp.einsum("bhqk,bhkd->bhqd", p, v).transpose(0, 2, 1, 3).reshape(B, T, C)
    x = x + y @ w_proj
    xn2 = ln(x, ln2_g[0])
    hdd = xn2 @ w_in
    hdd = 0.5 * hdd * (1.0 + lax.erf(hdd / math.sqrt(2.0)))
    return x + hdd @ w_out


def ref_pbt(params, x, pos, *, n_head):
    h = x @ params["w_proj_in"] + jnp.take(params["pos_emb"], pos, axis=0)
    for blk in params["blocks"]:
        h = _ref_encoder_layer(h, blk, n_head)
    logits = h[:, 0] @ params["w_cls"] + params["b_cls"][0]
    return h, logits


# ================================== main ====================================

if __name__ == "__main__":
    B, T, d_input = 2, 16, 16
    d_model, n_head, n_blocks = 64, 4, 2
    n_classes, num_embeddings = 8, 32

    key = jax.random.PRNGKey(0)
    key, kx, kp = jax.random.split(key, 3)
    x = jax.random.normal(kx, (B, T, d_input), jnp.float32)
    pos = jnp.tile(jnp.arange(T, dtype=jnp.int32)[None, :], (B, 1))
    params = make_params(kp, d_input=d_input, d_model=d_model,
                         n_blocks=n_blocks, n_head=n_head,
                         n_classes=n_classes, num_embeddings=num_embeddings)

    # Small tiles to exercise multi-step grids (production: q_tile>=128,
    # tok_tile>=256, h_tile>=256, C a multiple of 128).
    fwd = functools.partial(pbt_forward, n_head=n_head,
                            q_tile=8, tok_tile=16, h_tile=128)

    # --- exact path: f32 matmul operands, exact erf GELU, exact reciprocal --
    out, logits, extra = jax.block_until_ready(fwd(params, x, pos))
    ref_out, ref_logits = ref_pbt(params, x, pos, n_head=n_head)
    assert extra is None
    assert jnp.allclose(out, ref_out, atol=1e-4, rtol=1e-4), "f32 encoder mismatch"
    assert jnp.allclose(logits, ref_logits, atol=1e-4, rtol=1e-4), "f32 logits mismatch"

    # --- fast path: bf16 MXU operands / bf16 q,k,v storage (f32 accumulate),
    #     approx reciprocal + tanh GELU --------------------------------------
    params_bf16 = cast_matmul_weights(params, jnp.bfloat16)
    out_f, logits_f, _ = jax.block_until_ready(
        fwd(params_bf16, x, pos, approx_recip=True, approx_gelu=True))
    assert jnp.allclose(out_f, ref_out, atol=3e-2, rtol=3e-2), "bf16 encoder mismatch"
    assert jnp.allclose(logits_f, ref_logits, atol=3e-2, rtol=3e-2), "bf16 logits mismatch"

    print("KERNEL_OK")
</pallas_src>

<mosaic_0001>
module attributes {stable_mosaic.version = 11 : i64} {
  func.func @_embed_kernel(%arg0: i32, %arg1: memref<16x16xf32, #tpu.memory_space<vmem>>, %arg2: memref<16x64xf32, #tpu.memory_space<vmem>>, %arg3: memref<16x64xf32, #tpu.memory_space<vmem>>, %arg4: memref<16x64xf32, #tpu.memory_space<vmem>>) attributes {dimension_semantics = [#tpu.dimension_semantics<parallel>], iteration_bounds = array<i64: 2>, scalar_prefetch = 0 : i64, scratch_operands = 0 : i64, tpu.core_type = #tpu.core_type<tc>, window_params = [{transform_indices = @transform_0, window_bounds = array<i64: 16, 16>}, {pipeline_mode = #tpu.pipeline_mode<synchronous>, transform_indices = @transform_1, window_bounds = array<i64: 16, 64>}, {transform_indices = @transform_2, window_bounds = array<i64: 16, 64>}, {transform_indices = @transform_3, window_bounds = array<i64: 16, 64>}]} {
    %c0 = arith.constant 0 : index
    %c0_0 = arith.constant 0 : index
    %0 = vector.load %arg1[%c0, %c0_0] : memref<16x16xf32, #tpu.memory_space<vmem>>, vector<16x16xf32>
    %c0_1 = arith.constant 0 : index
    %c0_2 = arith.constant 0 : index
    %1 = vector.load %arg2[%c0_1, %c0_2] : memref<16x64xf32, #tpu.memory_space<vmem>>, vector<16x64xf32>
    %cst = arith.constant dense<0.000000e+00> : vector<16x64xf32>
    %2 = tpu.matmul %0, %1, %cst {dimension_numbers = #tpu.dot_dimension_numbers<[1], [0], [0], [1], [0, 0, 1, 1], [], []>} : vector<16x16xf32>, vector<16x64xf32>, vector<16x64xf32> -> vector<16x64xf32>
    %c0_3 = arith.constant 0 : index
    %c0_4 = arith.constant 0 : index
    %3 = vector.load %arg3[%c0_3, %c0_4] : memref<16x64xf32, #tpu.memory_space<vmem>>, vector<16x64xf32>
    %4 = arith.addf %2, %3 : vector<16x64xf32>
    %c0_5 = arith.constant 0 : index
    %c0_6 = arith.constant 0 : index
    %5 = vector.load %arg4[%c0_5, %c0_6] : memref<16x64xf32, #tpu.memory_space<vmem>>, vector<16x64xf32>
    tpu.vector_store %arg4[%c0_5, %c0_6], %4 {strides = array<i32>} : memref<16x64xf32, #tpu.memory_space<vmem>>, vector<16x64xf32>,
    return
  }
  func.func @transform_0(%arg0: i32) -> (i32, i32) {
    %c0_i32 = arith.constant 0 : i32
    %c0_i32_0 = arith.constant 0 : i32
    return %arg0, %c0_i32 : i32, i32
  }
  func.func @transform_1(%arg0: i32) -> (i32, i32) {
    %c0_i32 = arith.constant 0 : i32
    %c0_i32_0 = arith.constant 0 : i32
    %c0_i32_1 = arith.constant 0 : i32
    return %c0_i32, %c0_i32_0 : i32, i32
  }
  func.func @transform_2(%arg0: i32) -> (i32, i32) {
    %c0_i32 = arith.constant 0 : i32
    %c0_i32_0 = arith.constant 0 : i32
    return %arg0, %c0_i32 : i32, i32
  }
  func.func @transform_3(%arg0: i32) -> (i32, i32) {
    %c0_i32 = arith.constant 0 : i32
    %c0_i32_0 = arith.constant 0 : i32
    return %arg0, %c0_i32 : i32, i32
  }
}

</mosaic_0001>

<bundles_post_ra>
// kernel: tpu_custom_call.1
= control target key start
LH: loop header
LB: loop body
LE: loop exit
PB: predicated region body
PF: predicated region fallthrough
CT: control target
= control target key end

     0   :  { %8 = vsyncpa [#allocation3], 0  ;;  %s644_s0 = inlined_call_operand.vmem [shape: f32[32,16], index: 0, kind: input, shape index: {}]   ;;  %s645_s1 = inlined_call_operand.vmem [shape: f32[16,64], index: 1, kind: input, shape index: {}]   ;;  %s646_s2 = inlined_call_operand.vmem [shape: f32[32,64], index: 2, kind: input, shape index: {}]   ;;  %s647_s3 = inlined_call_operand.hbm [shape: f32[32,64], index: 3, kind: output, shape index: {}]  }
   0x1   :  { %10 = vsyncpa [#allocation3 + $0x1], 0  ;;  %s533_s12 = smov 0   ;;  %s535_s13 = smov 0  }
   0x2   :  { %s537_s14 = smov 0   ;;  %s539_s15 = smov 0  }
   0x3 LB: > { %s554_s16 = sadd.s32 4294967295, %s508_s15   ;;  %s373_s17 = sadd.s32 4294967294, %s508_s15   ;;  %s508_s15 = sphi %s539_s15, %s653_s15   ;;  %s504_s14 = sphi %s537_s14, %s652_s14   ;;  %s500_s13 = sphi %s535_s13, %s651_s13   ;;  %s496_s12 = sphi %s533_s12, %s650_s12  }
   0x4   : > { %s558_s18 = sadd.s32 1, %s508_s15   ;;  %s96_s19 = sadd.s32 1, %s504_s14 }
   0x5   : > { %s93_s20 = ssub.s32 %s508_s15, %s558_s18  ;;  %p106_p0 = scmp.ne.s32.totalorder %s504_s14, %s500_s13 }
   0x6   : > { %p94_p1 = scmp.eq.s32.totalorder %s93_s20, 0  ;;  %p107_p2 = scmp.eq.s32.totalorder %s554_s16, 1 }
   0x7   : > { %p112_p3 = scmp.ne.s32.totalorder %s500_s13, %s496_s12  ;;  %p113_p4 = scmp.eq.s32.totalorder %s373_s17, 1 }
   0x8   : > { %s569_s21 = scalar_select %p94_p1, %s504_s14, %s96_s19  }
   0x9   : > { %p571_p5 = por %p107_p2, %p106_p0  ;;  %p575_p6 = por %p113_p4, %p112_p3 }
   0xa   : > { %p376_p7 = scmp.ge.s32.totalorder %s508_s15, 1  ;;  %p152_p8 = scmp.lt.s32.totalorder %s508_s15, 3 }
   0xc   : > { %p153_p9 = pnand %p376_p7, %p152_p8 }
   0xd   : > { %v196_v0 = vld [vmem:[%s645_s1] sm:$0xff] (!%p153_p9)  ;;  %v197_v1 = vld [vmem:[%s645_s1 + $0x8] sm:$0xff] (!%p153_p9)  ;;  %s378_s28 = sshll.u32 (!%p153_p9), %s554_s16, 1  ;;  %vm200_vm0 = vcmask (!%p153_p9), 130048   ;;  %s178_s6 = sand.u32 (!%p153_p9), 1, %s500_s13   ;;  %vm282_vm1 = vcmask (!%p153_p9), 523264  }
   0xe   : > { %156 = sbr.rel (%p153_p9) target bundleno = 256 (0x100), region = 32  ;;  %v401_v2 = vpack.c.bf16 (!%p153_p9), %v197_v1, %v196_v0  ;;  %p182_p10 = scmp.lt.s32.totalorder (!%p153_p9), %s378_s28, 3 }
   0xf   : > { %s377_s7 = sshll.u32 (!%p153_p9), %s178_s6, 4  ;;  %s389_s19 = sshll.u32 (!%p153_p9), %s554_s16, 8 }
  0x10   : > { %402 = vmatprep.subr.bf16.mxu0 (!%p153_p9), %v401_v2  ;;  %s180_s11 = scalar_lea.vmem (!%p153_p9), [#allocation2], %s377_s7  ;;  %s601_s25 = scalar_lea.hbm (!%p153_p9), %s647_s3, %s389_s19 }
  0x11   : > { %404 = vmatpush3.bf16.msra.mxu0 (!%p153_p9), %v401_v2  ;;  %s299_s17 = sshll.u32 (!%p153_p9), %s180_s11, 4  ;;  %s603_s26 = scalar_lea.sflag (!%p153_p9), [#allocation3], %s178_s6  ;;  %s596_s17 = int_to_ptr.vmem [resolvable:$true] %s299_s17 }
  0x12   : > { %s446_s16 = scalar_lea.vmem (!%p153_p9), %s596_s17, 256  ;;  %s510_s27 = smov (!%p153_p9), [#allocation2]  }
  0x13   : > { %p447_p11 = scmp.ne.s32.totalorder (!%p153_p9), %s596_s17, %s446_s16 }
  0x15   : > { %s655_s28 = smov (!%p182_p10, %s378_s28), 3  ;;  %p448_p12 = pnand %p447_p11, %p571_p5 }
  0x16   : > { %s379_s29 = sshll.u32 %s655_s28, 3  ;;  %s450_s28 = sshll.u32 %s510_s27, 4  ;;  %s451_s28 = int_to_ptr.vmem [resolvable:$false] %s450_s28 }
  0x17   : > { %s185_s5 = scalar_lea.vmem %s644_s0, %s379_s29  ;;  %s191_s10 = scalar_lea.vmem %s646_s2, %s379_s29 }
  0x18   : > { %v194_v3 = vld [vmem:[%s185_s5] sm:$0xff]  ;;  %v195_v4 = vld [vmem:[%s185_s5 + $0x8] sm:$0xff]  ;;  %p449_p13 = pneg %p448_p12  ;;  %s452_s29 = scalar_lea.vmem %s451_s28, 512 }
  0x19   : > { %398 = vmatprep.mubr.msk.f32.mxu0 %vm200_vm0, %v194_v3  ;;  %v199_v5 = vld [vmem:[%s191_s10 + $0x8] sm:$0xff]  ;;  %v198_v6 = vld [vmem:[%s191_s10] sm:$0xff]  ;;  %p453_p0 = scmp.lt.s32.totalorder %s596_s17, %s451_s28  ;;  %p454_p1 = scmp.lt.s32.totalorder %s452_s29, %s446_s16 }
  0x1a   : > { %399 = vmatmul.mubr.msk.f32.vlgmr.msra.gmra.mrb[0].mxu0 %vm200_vm0, %v195_v4 }
  0x1b   : > { %p455_p2 = por %p454_p1, %p453_p0 }
  0x1d   : > { %p456_p3 = pnand %p455_p2, %p449_p13 }
  0xed   : > { %v400_v7 = vpop.f32.mrb[0].mxu0 }
  0xee   : > { %v279_v8 = vadd.f32 %v400_v7, %v199_v5  ;;  %v273_v9 = vpop.f32.mrb[1].mxu0 }
  0xef   : > { %v274_v10 = vadd.f32 %v273_v9, %v198_v6 }
  0xf0   : > { %284 = vst.msk [vmem:[%s180_s11 + $0x8] sm:$0xff] %vm282_vm1, %v279_v8 }
  0xf1   : > { %283 = vst.msk [vmem:[%s180_s11] sm:$0xff] %vm282_vm1, %v274_v10 }
  0xf2   : > { %459 = shalt.err (!%p456_p3)
}
  0xf3   : > { %s460_s30 = scalar_lea.hbm %s601_s25, 256  ;;  %s464_s6 = scalar_lea.hbm %s647_s3, 512 }
  0xf4   : > { %p461_p4 = scmp.ne.s32.totalorder %s601_s25, %s460_s30  ;;  %p465_p9 = scmp.lt.u32.totalorder %s601_s25, %s647_s3 }
  0xf5   : > { %p466_p10 = scmp.lt.u32.totalorder %s464_s6, %s460_s30  ;;  %p468_p12 = scmp.lt.u32.totalorder %s460_s30, %s601_s25 }
  0xf6   : > { %p462_p7 = pnand %p461_p4, %p571_p5 }
  0xf7   : > { %p467_p11 = por %p466_p10, %p465_p9 }
  0xf8   : > { %p463_p8 = pneg %p462_p7 }
  0xf9   : > { %p469_p13 = por %p468_p12, %p467_p11 }
  0xfb   : > { %p470_p0 = pnand %p469_p13, %p463_p8 }
  0xfd   : > { %473 = shalt.err (!%p470_p0)
}
  0xfe   : > { %s511_s9 = smov 128   ;;  %s512_s10 = smov 8  }
  0xff   : > { %405 = dma.vmem_to_hbm [thread:$0]  (%p571_p5), %s596_s17, 256, %s601_s25, %s603_s26, %s511_s9, %s511_s9, %s512_s10  }
 0x100 PF: > { %p411_p1 = scmp.ge.s32.totalorder %s508_s15, 2  ;;  %s314_s11 = sand.u32 1, %s496_s12  }
 0x101   : > { %s315_s19 = scalar_lea.sflag [#allocation3], %s314_s11 }
 0x102   : > { %p408_p2 = pnand %p411_p1, %p575_p6 }
 0x104   : > { %491 = dma.done.wait (!%p408_p2), %s315_s19, 256  }
 0x105   : > { %493 = vsyncadd (!%p408_p2), %s315_s19, 4294967040  ;;  %p13_p3 = scmp.ge.s32.totalorder %s558_s18, 4   ;;  %s650_s12 = smov %s500_s13 }
 0x106   : > { %s651_s13 = smov %s504_s14  ;;  %s652_s14 = smov %s569_s21 }
 0x107   : > { %s653_s15 = smov %s558_s18  ;;  %15 = sbr.rel (!%p13_p3) target bundleno = 3 (0x3), region = 70 }
 0x10e   :  { %320 = vsyncpa [#allocation3], 1 }
 0x10f   :  { %322 = vsyncpa [#allocation3 + $0x1], 1 }

</bundles_post_ra>
